<compile_context>
chip_gen: v7x
topology: tpu7x:2x2x1
jax: 0.10.0
libtpu: 0.0.40
codegen_flags: <defaults>
</compile_context>

<pallas_src>
import functools

import jax
import jax.numpy as jnp
from jax import lax
from jax.experimental import pallas as pl
from jax.experimental.pallas import tpu as pltpu


# ----------------------------- Pallas kernel --------------------------------
def basic_block_kernel(x_ref, w1_ref, b1_ref, w2_ref, b2_ref, out_ref, *, H, W):
    """One image per grid step, everything lane-dense on H*W.

    x_ref  : (1, Cin, H*W)   input image (channels-first, spatial flattened)
    w1_ref : (9, Cmid, Cin)  conv1 weights * bn1 scale, one slab per 3x3 tap
    b1_ref : (Cmid, 1)       bn1 shift
    w2_ref : (9, Cout, Cmid) conv2 weights * bn2 scale
    b2_ref : (Cout, 1)       bn2 shift
    out_ref: (1, Cout, H*W)
    """
    HW = H * W
    PAD = W + 1                      # largest |flat shift| of a 3x3 tap
    f32 = jnp.float32

    x = x_ref[0].astype(f32)         # (Cin, HW) — also the residual

    # Column-edge validity masks in output coordinates (row edges are fully
    # covered by the flat zero padding below).  Shared by both convs.
    col = lax.broadcasted_iota(jnp.int32, (1, HW), 1) % W
    col_ok = {-1: (col >= 1), 0: None, 1: (col < W - 1)}

    taps = [(dh, dw) for dh in (-1, 0, 1) for dw in (-1, 0, 1)]

    def conv3x3(v, w_ref):
        """3x3 'SAME' conv of v:(Cin, HW) with w_ref:(9, Cout, Cin) -> (Cout, HW)."""
        c = v.shape[0]
        zeros = jnp.zeros((c, PAD), f32)
        vp = jnp.concatenate([zeros, v, zeros], axis=1)     # (C, HW + 2*PAD)
        acc = None
        for t, (dh, dw) in enumerate(taps):
            start = PAD + dh * W + dw                       # static slice start
            piece = vp[:, start:start + HW]                 # (C, HW)
            m = col_ok[dw]
            if m is not None:
                piece = jnp.where(m, piece, 0.0)
            contrib = jnp.dot(w_ref[t], piece, preferred_element_type=f32)
            acc = contrib if acc is None else acc + contrib
        return acc

    # conv1 (+ folded bn1 scale) + shift + relu
    y = jnp.maximum(conv3x3(x, w1_ref) + b1_ref[...], 0.0)
    # conv2 (+ folded bn2 scale) + shift + residual + relu
    z = jnp.maximum(conv3x3(y, w2_ref) + b2_ref[...] + x, 0.0)

    out_ref[0] = z.astype(out_ref.dtype)


# ------------------------------- wrapper -------------------------------------
def basic_block(x_nchw, w1, s1, b1, w2, s2, b2):
    """x_nchw: (N, Cin, H, W) float32, w1/w2 in HWIO. Returns (N, Cout, H, W)."""
    x = x_nchw.astype(jnp.float32)
    n, cin, h, w = x.shape
    cmid = w1.shape[3]
    cout = w2.shape[3]
    assert cin == cout, "identity shortcut requires inplanes == planes"
    hw = h * w

    # channels-first, spatial flattened (pure reshape of NCHW — lane-dense on H*W)
    x_cf = x.reshape(n, cin, hw)

    # fold BN scale into conv weights; (3,3,Ci,Co) -> (9, Co, Ci) tap slabs
    w1k = (jnp.transpose(w1, (0, 1, 3, 2)).reshape(9, cmid, cin)
           * s1[None, :, None]).astype(jnp.float32)
    w2k = (jnp.transpose(w2, (0, 1, 3, 2)).reshape(9, cout, cmid)
           * s2[None, :, None]).astype(jnp.float32)
    b1_ = b1.reshape(cmid, 1).astype(jnp.float32)
    b2_ = b2.reshape(cout, 1).astype(jnp.float32)

    kernel = functools.partial(basic_block_kernel, H=h, W=w)

    out_cf = pl.pallas_call(
        kernel,
        out_shape=jax.ShapeDtypeStruct((n, cout, hw), jnp.float32),
        grid_spec=pltpu.PrefetchScalarGridSpec(
            num_scalar_prefetch=0,
            grid=(n,),                                     # parallel axis (megacore)
            in_specs=[
                pl.BlockSpec((1, cin, hw),     lambda i: (i, 0, 0)),
                pl.BlockSpec((9, cmid, cin),   lambda i: (0, 0, 0)),
                pl.BlockSpec((cmid, 1),        lambda i: (0, 0)),
                pl.BlockSpec((9, cout, cmid),  lambda i: (0, 0, 0)),
                pl.BlockSpec((cout, 1),        lambda i: (0, 0)),
            ],
            out_specs=pl.BlockSpec((1, cout, hw), lambda i: (i, 0, 0)),
        ),
        compiler_params=pltpu.CompilerParams(
            dimension_semantics=("parallel",)),
    )(x_cf, w1k, b1_, w2k, b2_)

    return out_cf.reshape(n, cout, h, w)                   # back to NCHW


# --------------------------- pure-JAX reference -------------------------------
def basic_block_ref(x_nchw, w1, s1, b1, w2, s2, b2):
    x = jnp.transpose(x_nchw, (0, 2, 3, 1)).astype(jnp.float32)
    dn = ("NHWC", "HWIO", "NHWC")
    y = lax.conv_general_dilated(x, w1, (1, 1), "SAME", dimension_numbers=dn,
                                 precision=lax.Precision.HIGHEST)
    y = jnp.maximum(y * s1 + b1, 0.0)
    z = lax.conv_general_dilated(y, w2, (1, 1), "SAME", dimension_numbers=dn,
                                 precision=lax.Precision.HIGHEST)
    z = jnp.maximum(z * s2 + b2 + x, 0.0)
    return jnp.transpose(z, (0, 3, 1, 2))


# --------------------------------- main ---------------------------------------
if __name__ == "__main__":
    # BasicBlock(inplanes=4, planes=4, cfg=4, stride=1, downsample=None)
    N, CIN, H, W = 2, 4, 16, 16
    CFG, PLANES = 4, 4
    EPS = 1e-5

    key = jax.random.PRNGKey(0)
    ks = jax.random.split(key, 11)

    x = jax.random.normal(ks[0], (N, CIN, H, W), jnp.float32)

    # conv weights, HWIO layout (== transpose of PyTorch OIHW)
    w1 = jax.random.normal(ks[1], (3, 3, CIN, CFG), jnp.float32) * 0.2
    w2 = jax.random.normal(ks[2], (3, 3, CFG, PLANES), jnp.float32) * 0.2

    # BatchNorm parameters (eval mode), deterministic & non-trivial
    g1 = 0.5 + jax.random.uniform(ks[3], (CFG,), jnp.float32)
    be1 = 0.1 * jax.random.normal(ks[4], (CFG,), jnp.float32)
    rm1 = 0.1 * jax.random.normal(ks[5], (CFG,), jnp.float32)
    rv1 = 0.5 + jax.random.uniform(ks[6], (CFG,), jnp.float32)
    g2 = 0.5 + jax.random.uniform(ks[7], (PLANES,), jnp.float32)
    be2 = 0.1 * jax.random.normal(ks[8], (PLANES,), jnp.float32)
    rm2 = 0.1 * jax.random.normal(ks[9], (PLANES,), jnp.float32)
    rv2 = 0.5 + jax.random.uniform(ks[10], (PLANES,), jnp.float32)

    # fold BN (eval mode) into per-channel scale/shift
    s1 = g1 / jnp.sqrt(rv1 + EPS)
    b1 = be1 - rm1 * s1
    s2 = g2 / jnp.sqrt(rv2 + EPS)
    b2 = be2 - rm2 * s2

    out = basic_block(x, w1, s1, b1, w2, s2, b2)
    out = jax.block_until_ready(out)

    ref = basic_block_ref(x, w1, s1, b1, w2, s2, b2)
    assert out.shape == (N, PLANES, H, W)
    assert jnp.allclose(out, ref, atol=1e-3, rtol=1e-3), "mismatch vs reference"

    print("KERNEL_OK")
</pallas_src>

<mosaic_0001>
module attributes {stable_mosaic.version = 11 : i64} {
  func.func @basic_block_kernel(%arg0: i32, %arg1: memref<1x4x256xf32, #tpu.memory_space<vmem>>, %arg2: memref<9x4x4xf32, #tpu.memory_space<vmem>>, %arg3: memref<4x1xf32, #tpu.memory_space<vmem>>, %arg4: memref<9x4x4xf32, #tpu.memory_space<vmem>>, %arg5: memref<4x1xf32, #tpu.memory_space<vmem>>, %arg6: memref<1x4x256xf32, #tpu.memory_space<vmem>>) attributes {dimension_semantics = [#tpu.dimension_semantics<parallel>], iteration_bounds = array<i64: 2>, scalar_prefetch = 0 : i64, scratch_operands = 0 : i64, tpu.core_type = #tpu.core_type<tc>, window_params = [{transform_indices = @transform_0, window_bounds = array<i64: 1, 4, 256>}, {pipeline_mode = #tpu.pipeline_mode<synchronous>, transform_indices = @transform_1, window_bounds = array<i64: 9, 4, 4>}, {pipeline_mode = #tpu.pipeline_mode<synchronous>, transform_indices = @transform_2, window_bounds = array<i64: 4, 1>}, {pipeline_mode = #tpu.pipeline_mode<synchronous>, transform_indices = @transform_3, window_bounds = array<i64: 9, 4, 4>}, {pipeline_mode = #tpu.pipeline_mode<synchronous>, transform_indices = @transform_4, window_bounds = array<i64: 4, 1>}, {transform_indices = @transform_5, window_bounds = array<i64: 1, 4, 256>}]} {
    %c0 = arith.constant 0 : index
    %c0_0 = arith.constant 0 : index
    %c0_1 = arith.constant 0 : index
    %0 = vector.load %arg1[%c0, %c0_0, %c0_1] : memref<1x4x256xf32, #tpu.memory_space<vmem>>, vector<1x4x256xf32>
    %1 = vector.shape_cast %0 : vector<1x4x256xf32> to vector<4x256xf32>
    %2 = tpu.iota {dimensions = array<i32: 1>} : vector<1x256xi32>
    %c16_i32 = arith.constant 16 : i32
    %c0_i32 = arith.constant 0 : i32
    %3 = arith.cmpi eq, %c16_i32, %c0_i32 : i32
    %c1_i32 = arith.constant 1 : i32
    %4 = arith.select %3, %c1_i32, %c16_i32 : i32
    %5 = vector.broadcast %4 : i32 to vector<1x256xi32>
    %6 = arith.remsi %2, %5 : vector<1x256xi32>
    %c0_i32_2 = arith.constant 0 : i32
    %7 = vector.broadcast %c0_i32_2 : i32 to vector<1x256xi32>
    %8 = arith.cmpi ne, %6, %7 : vector<1x256xi32>
    %c0_i32_3 = arith.constant 0 : i32
    %9 = vector.broadcast %c0_i32_3 : i32 to vector<1x256xi32>
    %10 = arith.cmpi slt, %6, %9 : vector<1x256xi32>
    %c0_i32_4 = arith.constant 0 : i32
    %11 = arith.cmpi slt, %4, %c0_i32_4 : i32
    %12 = vector.broadcast %11 : i1 to vector<1x256xi1>
    %13 = vector.broadcast %12 : vector<1x256xi1> to vector<1x256xi1>
    %14 = arith.xori %10, %13 : vector<1x256xi1>
    %15 = arith.andi %14, %8 : vector<1x256xi1>
    %16 = vector.broadcast %4 : i32 to vector<1x256xi32>
    %17 = arith.addi %6, %16 : vector<1x256xi32>
    %18 = arith.select %15, %17, %6 : vector<1x256xi1>, vector<1x256xi32>
    %c1_i32_5 = arith.constant 1 : i32
    %19 = vector.broadcast %c1_i32_5 : i32 to vector<1x256xi32>
    %20 = arith.cmpi sge, %18, %19 : vector<1x256xi32>
    %c15_i32 = arith.constant 15 : i32
    %21 = vector.broadcast %c15_i32 : i32 to vector<1x256xi32>
    %22 = arith.cmpi slt, %18, %21 : vector<1x256xi32>
    %cst = arith.constant 0.000000e+00 : f32
    %23 = vector.broadcast %cst : f32 to vector<4x17xf32>
    %24 = tpu.concatenate %23, %1, %23 in 1 : vector<4x17xf32>, vector<4x256xf32>, vector<4x17xf32> -> vector<4x290xf32>
    %25 = vector.extract_strided_slice %24 {offsets = [0, 0], sizes = [4, 256], strides = [1, 1]} : vector<4x290xf32> to vector<4x256xf32>
    %cst_6 = arith.constant 0.000000e+00 : f32
    %26 = vector.shape_cast %20 : vector<1x256xi1> to vector<1x256xi1>
    %27 = vector.broadcast %26 : vector<1x256xi1> to vector<4x256xi1>
    %28 = vector.broadcast %cst_6 : f32 to vector<4x256xf32>
    %29 = arith.select %27, %25, %28 : vector<4x256xi1>, vector<4x256xf32>
    %c0_7 = arith.constant 0 : index
    %c0_8 = arith.constant 0 : index
    %c0_9 = arith.constant 0 : index
    %30 = vector.load %arg2[%c0_7, %c0_8, %c0_9] : memref<9x4x4xf32, #tpu.memory_space<vmem>>, vector<1x4x4xf32>
    %31 = vector.shape_cast %30 : vector<1x4x4xf32> to vector<4x4xf32>
    %cst_10 = arith.constant dense<0.000000e+00> : vector<4x256xf32>
    %32 = tpu.matmul %31, %29, %cst_10 {dimension_numbers = #tpu.dot_dimension_numbers<[1], [0], [0], [1], [0, 0, 1, 1], [], []>} : vector<4x4xf32>, vector<4x256xf32>, vector<4x256xf32> -> vector<4x256xf32>
    %33 = vector.extract_strided_slice %24 {offsets = [0, 1], sizes = [4, 256], strides = [1, 1]} : vector<4x290xf32> to vector<4x256xf32>
    %c1 = arith.constant 1 : index
    %c0_11 = arith.constant 0 : index
    %c0_12 = arith.constant 0 : index
    %34 = vector.load %arg2[%c1, %c0_11, %c0_12] : memref<9x4x4xf32, #tpu.memory_space<vmem>>, vector<1x4x4xf32>
    %35 = vector.shape_cast %34 : vector<1x4x4xf32> to vector<4x4xf32>
    %cst_13 = arith.constant dense<0.000000e+00> : vector<4x256xf32>
    %36 = tpu.matmul %35, %33, %cst_13 {dimension_numbers = #tpu.dot_dimension_numbers<[1], [0], [0], [1], [0, 0, 1, 1], [], []>} : vector<4x4xf32>, vector<4x256xf32>, vector<4x256xf32> -> vector<4x256xf32>
    %37 = arith.addf %32, %36 : vector<4x256xf32>
    %38 = vector.extract_strided_slice %24 {offsets = [0, 2], sizes = [4, 256], strides = [1, 1]} : vector<4x290xf32> to vector<4x256xf32>
    %cst_14 = arith.constant 0.000000e+00 : f32
    %39 = vector.shape_cast %22 : vector<1x256xi1> to vector<1x256xi1>
    %40 = vector.broadcast %39 : vector<1x256xi1> to vector<4x256xi1>
    %41 = vector.broadcast %cst_14 : f32 to vector<4x256xf32>
    %42 = arith.select %40, %38, %41 : vector<4x256xi1>, vector<4x256xf32>
    %c2 = arith.constant 2 : index
    %c0_15 = arith.constant 0 : index
    %c0_16 = arith.constant 0 : index
    %43 = vector.load %arg2[%c2, %c0_15, %c0_16] : memref<9x4x4xf32, #tpu.memory_space<vmem>>, vector<1x4x4xf32>
    %44 = vector.shape_cast %43 : vector<1x4x4xf32> to vector<4x4xf32>
    %cst_17 = arith.constant dense<0.000000e+00> : vector<4x256xf32>
    %45 = tpu.matmul %44, %42, %cst_17 {dimension_numbers = #tpu.dot_dimension_numbers<[1], [0], [0], [1], [0, 0, 1, 1], [], []>} : vector<4x4xf32>, vector<4x256xf32>, vector<4x256xf32> -> vector<4x256xf32>
    %46 = arith.addf %37, %45 : vector<4x256xf32>
    %47 = vector.extract_strided_slice %24 {offsets = [0, 16], sizes = [4, 256], strides = [1, 1]} : vector<4x290xf32> to vector<4x256xf32>
    %cst_18 = arith.constant 0.000000e+00 : f32
    %48 = vector.shape_cast %20 : vector<1x256xi1> to vector<1x256xi1>
    %49 = vector.broadcast %48 : vector<1x256xi1> to vector<4x256xi1>
    %50 = vector.broadcast %cst_18 : f32 to vector<4x256xf32>
    %51 = arith.select %49, %47, %50 : vector<4x256xi1>, vector<4x256xf32>
    %c3 = arith.constant 3 : index
    %c0_19 = arith.constant 0 : index
    %c0_20 = arith.constant 0 : index
    %52 = vector.load %arg2[%c3, %c0_19, %c0_20] : memref<9x4x4xf32, #tpu.memory_space<vmem>>, vector<1x4x4xf32>
    %53 = vector.shape_cast %52 : vector<1x4x4xf32> to vector<4x4xf32>
    %cst_21 = arith.constant dense<0.000000e+00> : vector<4x256xf32>
    %54 = tpu.matmul %53, %51, %cst_21 {dimension_numbers = #tpu.dot_dimension_numbers<[1], [0], [0], [1], [0, 0, 1, 1], [], []>} : vector<4x4xf32>, vector<4x256xf32>, vector<4x256xf32> -> vector<4x256xf32>
    %55 = arith.addf %46, %54 : vector<4x256xf32>
    %56 = vector.extract_strided_slice %24 {offsets = [0, 17], sizes = [4, 256], strides = [1, 1]} : vector<4x290xf32> to vector<4x256xf32>
    %c4 = arith.constant 4 : index
    %c0_22 = arith.constant 0 : index
    %c0_23 = arith.constant 0 : index
    %57 = vector.load %arg2[%c4, %c0_22, %c0_23] : memref<9x4x4xf32, #tpu.memory_space<vmem>>, vector<1x4x4xf32>
    %58 = vector.shape_cast %57 : vector<1x4x4xf32> to vector<4x4xf32>
    %cst_24 = arith.constant dense<0.000000e+00> : vector<4x256xf32>
    %59 = tpu.matmul %58, %56, %cst_24 {dimension_numbers = #tpu.dot_dimension_numbers<[1], [0], [0], [1], [0, 0, 1, 1], [], []>} : vector<4x4xf32>, vector<4x256xf32>, vector<4x256xf32> -> vector<4x256xf32>
    %60 = arith.addf %55, %59 : vector<4x256xf32>
    %61 = vector.extract_strided_slice %24 {offsets = [0, 18], sizes = [4, 256], strides = [1, 1]} : vector<4x290xf32> to vector<4x256xf32>
    %cst_25 = arith.constant 0.000000e+00 : f32
    %62 = vector.shape_cast %22 : vector<1x256xi1> to vector<1x256xi1>
    %63 = vector.broadcast %62 : vector<1x256xi1> to vector<4x256xi1>
    %64 = vector.broadcast %cst_25 : f32 to vector<4x256xf32>
    %65 = arith.select %63, %61, %64 : vector<4x256xi1>, vector<4x256xf32>
    %c5 = arith.constant 5 : index
    %c0_26 = arith.constant 0 : index
    %c0_27 = arith.constant 0 : index
    %66 = vector.load %arg2[%c5, %c0_26, %c0_27] : memref<9x4x4xf32, #tpu.memory_space<vmem>>, vector<1x4x4xf32>
    %67 = vector.shape_cast %66 : vector<1x4x4xf32> to vector<4x4xf32>
    %cst_28 = arith.constant dense<0.000000e+00> : vector<4x256xf32>
    %68 = tpu.matmul %67, %65, %cst_28 {dimension_numbers = #tpu.dot_dimension_numbers<[1], [0], [0], [1], [0, 0, 1, 1], [], []>} : vector<4x4xf32>, vector<4x256xf32>, vector<4x256xf32> -> vector<4x256xf32>
    %69 = arith.addf %60, %68 : vector<4x256xf32>
    %70 = vector.extract_strided_slice %24 {offsets = [0, 32], sizes = [4, 256], strides = [1, 1]} : vector<4x290xf32> to vector<4x256xf32>
    %cst_29 = arith.constant 0.000000e+00 : f32
    %71 = vector.shape_cast %20 : vector<1x256xi1> to vector<1x256xi1>
    %72 = vector.broadcast %71 : vector<1x256xi1> to vector<4x256xi1>
    %73 = vector.broadcast %cst_29 : f32 to vector<4x256xf32>
    %74 = arith.select %72, %70, %73 : vector<4x256xi1>, vector<4x256xf32>
    %c6 = arith.constant 6 : index
    %c0_30 = arith.constant 0 : index
    %c0_31 = arith.constant 0 : index
    %75 = vector.load %arg2[%c6, %c0_30, %c0_31] : memref<9x4x4xf32, #tpu.memory_space<vmem>>, vector<1x4x4xf32>
    %76 = vector.shape_cast %75 : vector<1x4x4xf32> to vector<4x4xf32>
    %cst_32 = arith.constant dense<0.000000e+00> : vector<4x256xf32>
    %77 = tpu.matmul %76, %74, %cst_32 {dimension_numbers = #tpu.dot_dimension_numbers<[1], [0], [0], [1], [0, 0, 1, 1], [], []>} : vector<4x4xf32>, vector<4x256xf32>, vector<4x256xf32> -> vector<4x256xf32>
    %78 = arith.addf %69, %77 : vector<4x256xf32>
    %79 = vector.extract_strided_slice %24 {offsets = [0, 33], sizes = [4, 256], strides = [1, 1]} : vector<4x290xf32> to vector<4x256xf32>
    %c7 = arith.constant 7 : index
    %c0_33 = arith.constant 0 : index
    %c0_34 = arith.constant 0 : index
    %80 = vector.load %arg2[%c7, %c0_33, %c0_34] : memref<9x4x4xf32, #tpu.memory_space<vmem>>, vector<1x4x4xf32>
    %81 = vector.shape_cast %80 : vector<1x4x4xf32> to vector<4x4xf32>
    %cst_35 = arith.constant dense<0.000000e+00> : vector<4x256xf32>
    %82 = tpu.matmul %81, %79, %cst_35 {dimension_numbers = #tpu.dot_dimension_numbers<[1], [0], [0], [1], [0, 0, 1, 1], [], []>} : vector<4x4xf32>, vector<4x256xf32>, vector<4x256xf32> -> vector<4x256xf32>
    %83 = arith.addf %78, %82 : vector<4x256xf32>
    %84 = vector.extract_strided_slice %24 {offsets = [0, 34], sizes = [4, 256], strides = [1, 1]} : vector<4x290xf32> to vector<4x256xf32>
    %cst_36 = arith.constant 0.000000e+00 : f32
    %85 = vector.shape_cast %22 : vector<1x256xi1> to vector<1x256xi1>
    %86 = vector.broadcast %85 : vector<1x256xi1> to vector<4x256xi1>
    %87 = vector.broadcast %cst_36 : f32 to vector<4x256xf32>
    %88 = arith.select %86, %84, %87 : vector<4x256xi1>, vector<4x256xf32>
    %c8 = arith.constant 8 : index
    %c0_37 = arith.constant 0 : index
    %c0_38 = arith.constant 0 : index
    %89 = vector.load %arg2[%c8, %c0_37, %c0_38] : memref<9x4x4xf32, #tpu.memory_space<vmem>>, vector<1x4x4xf32>
    %90 = vector.shape_cast %89 : vector<1x4x4xf32> to vector<4x4xf32>
    %cst_39 = arith.constant dense<0.000000e+00> : vector<4x256xf32>
    %91 = tpu.matmul %90, %88, %cst_39 {dimension_numbers = #tpu.dot_dimension_numbers<[1], [0], [0], [1], [0, 0, 1, 1], [], []>} : vector<4x4xf32>, vector<4x256xf32>, vector<4x256xf32> -> vector<4x256xf32>
    %92 = arith.addf %83, %91 : vector<4x256xf32>
    %c0_40 = arith.constant 0 : index
    %c0_41 = arith.constant 0 : index
    %93 = vector.load %arg3[%c0_40, %c0_41] : memref<4x1xf32, #tpu.memory_space<vmem>>, vector<4x1xf32>
    %94 = vector.broadcast %93 : vector<4x1xf32> to vector<4x256xf32>
    %95 = arith.addf %92, %94 : vector<4x256xf32>
    %cst_42 = arith.constant 0.000000e+00 : f32
    %96 = vector.broadcast %cst_42 : f32 to vector<4x256xf32>
    %97 = arith.maximumf %95, %96 : vector<4x256xf32>
    %cst_43 = arith.constant 0.000000e+00 : f32
    %98 = vector.broadcast %cst_43 : f32 to vector<4x17xf32>
    %99 = tpu.concatenate %98, %97, %98 in 1 : vector<4x17xf32>, vector<4x256xf32>, vector<4x17xf32> -> vector<4x290xf32>
    %100 = vector.extract_strided_slice %99 {offsets = [0, 0], sizes = [4, 256], strides = [1, 1]} : vector<4x290xf32> to vector<4x256xf32>
    %cst_44 = arith.constant 0.000000e+00 : f32
    %101 = vector.shape_cast %20 : vector<1x256xi1> to vector<1x256xi1>
    %102 = vector.broadcast %101 : vector<1x256xi1> to vector<4x256xi1>
    %103 = vector.broadcast %cst_44 : f32 to vector<4x256xf32>
    %104 = arith.select %102, %100, %103 : vector<4x256xi1>, vector<4x256xf32>
    %c0_45 = arith.constant 0 : index
    %c0_46 = arith.constant 0 : index
    %c0_47 = arith.constant 0 : index
    %105 = vector.load %arg4[%c0_45, %c0_46, %c0_47] : memref<9x4x4xf32, #tpu.memory_space<vmem>>, vector<1x4x4xf32>
    %106 = vector.shape_cast %105 : vector<1x4x4xf32> to vector<4x4xf32>
    %cst_48 = arith.constant dense<0.000000e+00> : vector<4x256xf32>
    %107 = tpu.matmul %106, %104, %cst_48 {dimension_numbers = #tpu.dot_dimension_numbers<[1], [0], [0], [1], [0, 0, 1, 1], [], []>} : vector<4x4xf32>, vector<4x256xf32>, vector<4x256xf32> -> vector<4x256xf32>
    %108 = vector.extract_strided_slice %99 {offsets = [0, 1], sizes = [4, 256], strides = [1, 1]} : vector<4x290xf32> to vector<4x256xf32>
    %c1_49 = arith.constant 1 : index
    %c0_50 = arith.constant 0 : index
    %c0_51 = arith.constant 0 : index
    %109 = vector.load %arg4[%c1_49, %c0_50, %c0_51] : memref<9x4x4xf32, #tpu.memory_space<vmem>>, vector<1x4x4xf32>
    %110 = vector.shape_cast %109 : vector<1x4x4xf32> to vector<4x4xf32>
    %cst_52 = arith.constant dense<0.000000e+00> : vector<4x256xf32>
    %111 = tpu.matmul %110, %108, %cst_52 {dimension_numbers = #tpu.dot_dimension_numbers<[1], [0], [0], [1], [0, 0, 1, 1], [], []>} : vector<4x4xf32>, vector<4x256xf32>, vector<4x256xf32> -> vector<4x256xf32>
    %112 = arith.addf %107, %111 : vector<4x256xf32>
    %113 = vector.extract_strided_slice %99 {offsets = [0, 2], sizes = [4, 256], strides = [1, 1]} : vector<4x290xf32> to vector<4x256xf32>
    %cst_53 = arith.constant 0.000000e+00 : f32
    %114 = vector.shape_cast %22 : vector<1x256xi1> to vector<1x256xi1>
    %115 = vector.broadcast %114 : vector<1x256xi1> to vector<4x256xi1>
    %116 = vector.broadcast %cst_53 : f32 to vector<4x256xf32>
    %117 = arith.select %115, %113, %116 : vector<4x256xi1>, vector<4x256xf32>
    %c2_54 = arith.constant 2 : index
    %c0_55 = arith.constant 0 : index
    %c0_56 = arith.constant 0 : index
    %118 = vector.load %arg4[%c2_54, %c0_55, %c0_56] : memref<9x4x4xf32, #tpu.memory_space<vmem>>, vector<1x4x4xf32>
    %119 = vector.shape_cast %118 : vector<1x4x4xf32> to vector<4x4xf32>
    %cst_57 = arith.constant dense<0.000000e+00> : vector<4x256xf32>
    %120 = tpu.matmul %119, %117, %cst_57 {dimension_numbers = #tpu.dot_dimension_numbers<[1], [0], [0], [1], [0, 0, 1, 1], [], []>} : vector<4x4xf32>, vector<4x256xf32>, vector<4x256xf32> -> vector<4x256xf32>
    %121 = arith.addf %112, %120 : vector<4x256xf32>
    %122 = vector.extract_strided_slice %99 {offsets = [0, 16], sizes = [4, 256], strides = [1, 1]} : vector<4x290xf32> to vector<4x256xf32>
    %cst_58 = arith.constant 0.000000e+00 : f32
    %123 = vector.shape_cast %20 : vector<1x256xi1> to vector<1x256xi1>
    %124 = vector.broadcast %123 : vector<1x256xi1> to vector<4x256xi1>
    %125 = vector.broadcast %cst_58 : f32 to vector<4x256xf32>
    %126 = arith.select %124, %122, %125 : vector<4x256xi1>, vector<4x256xf32>
    %c3_59 = arith.constant 3 : index
    %c0_60 = arith.constant 0 : index
    %c0_61 = arith.constant 0 : index
    %127 = vector.load %arg4[%c3_59, %c0_60, %c0_61] : memref<9x4x4xf32, #tpu.memory_space<vmem>>, vector<1x4x4xf32>
    %128 = vector.shape_cast %127 : vector<1x4x4xf32> to vector<4x4xf32>
    %cst_62 = arith.constant dense<0.000000e+00> : vector<4x256xf32>
    %129 = tpu.matmul %128, %126, %cst_62 {dimension_numbers = #tpu.dot_dimension_numbers<[1], [0], [0], [1], [0, 0, 1, 1], [], []>} : vector<4x4xf32>, vector<4x256xf32>, vector<4x256xf32> -> vector<4x256xf32>
    %130 = arith.addf %121, %129 : vector<4x256xf32>
    %131 = vector.extract_strided_slice %99 {offsets = [0, 17], sizes = [4, 256], strides = [1, 1]} : vector<4x290xf32> to vector<4x256xf32>
    %c4_63 = arith.constant 4 : index
    %c0_64 = arith.constant 0 : index
    %c0_65 = arith.constant 0 : index
    %132 = vector.load %arg4[%c4_63, %c0_64, %c0_65] : memref<9x4x4xf32, #tpu.memory_space<vmem>>, vector<1x4x4xf32>
    %133 = vector.shape_cast %132 : vector<1x4x4xf32> to vector<4x4xf32>
    %cst_66 = arith.constant dense<0.000000e+00> : vector<4x256xf32>
    %134 = tpu.matmul %133, %131, %cst_66 {dimension_numbers = #tpu.dot_dimension_numbers<[1], [0], [0], [1], [0, 0, 1, 1], [], []>} : vector<4x4xf32>, vector<4x256xf32>, vector<4x256xf32> -> vector<4x256xf32>
    %135 = arith.addf %130, %134 : vector<4x256xf32>
    %136 = vector.extract_strided_slice %99 {offsets = [0, 18], sizes = [4, 256], strides = [1, 1]} : vector<4x290xf32> to vector<4x256xf32>
    %cst_67 = arith.constant 0.000000e+00 : f32
    %137 = vector.shape_cast %22 : vector<1x256xi1> to vector<1x256xi1>
    %138 = vector.broadcast %137 : vector<1x256xi1> to vector<4x256xi1>
    %139 = vector.broadcast %cst_67 : f32 to vector<4x256xf32>
    %140 = arith.select %138, %136, %139 : vector<4x256xi1>, vector<4x256xf32>
    %c5_68 = arith.constant 5 : index
    %c0_69 = arith.constant 0 : index
    %c0_70 = arith.constant 0 : index
    %141 = vector.load %arg4[%c5_68, %c0_69, %c0_70] : memref<9x4x4xf32, #tpu.memory_space<vmem>>, vector<1x4x4xf32>
    %142 = vector.shape_cast %141 : vector<1x4x4xf32> to vector<4x4xf32>
    %cst_71 = arith.constant dense<0.000000e+00> : vector<4x256xf32>
    %143 = tpu.matmul %142, %140, %cst_71 {dimension_numbers = #tpu.dot_dimension_numbers<[1], [0], [0], [1], [0, 0, 1, 1], [], []>} : vector<4x4xf32>, vector<4x256xf32>, vector<4x256xf32> -> vector<4x256xf32>
    %144 = arith.addf %135, %143 : vector<4x256xf32>
    %145 = vector.extract_strided_slice %99 {offsets = [0, 32], sizes = [4, 256], strides = [1, 1]} : vector<4x290xf32> to vector<4x256xf32>
    %cst_72 = arith.constant 0.000000e+00 : f32
    %146 = vector.shape_cast %20 : vector<1x256xi1> to vector<1x256xi1>
    %147 = vector.broadcast %146 : vector<1x256xi1> to vector<4x256xi1>
    %148 = vector.broadcast %cst_72 : f32 to vector<4x256xf32>
    %149 = arith.select %147, %145, %148 : vector<4x256xi1>, vector<4x256xf32>
    %c6_73 = arith.constant 6 : index
    %c0_74 = arith.constant 0 : index
    %c0_75 = arith.constant 0 : index
    %150 = vector.load %arg4[%c6_73, %c0_74, %c0_75] : memref<9x4x4xf32, #tpu.memory_space<vmem>>, vector<1x4x4xf32>
    %151 = vector.shape_cast %150 : vector<1x4x4xf32> to vector<4x4xf32>
    %cst_76 = arith.constant dense<0.000000e+00> : vector<4x256xf32>
    %152 = tpu.matmul %151, %149, %cst_76 {dimension_numbers = #tpu.dot_dimension_numbers<[1], [0], [0], [1], [0, 0, 1, 1], [], []>} : vector<4x4xf32>, vector<4x256xf32>, vector<4x256xf32> -> vector<4x256xf32>
    %153 = arith.addf %144, %152 : vector<4x256xf32>
    %154 = vector.extract_strided_slice %99 {offsets = [0, 33], sizes = [4, 256], strides = [1, 1]} : vector<4x290xf32> to vector<4x256xf32>
    %c7_77 = arith.constant 7 : index
    %c0_78 = arith.constant 0 : index
    %c0_79 = arith.constant 0 : index
    %155 = vector.load %arg4[%c7_77, %c0_78, %c0_79] : memref<9x4x4xf32, #tpu.memory_space<vmem>>, vector<1x4x4xf32>
    %156 = vector.shape_cast %155 : vector<1x4x4xf32> to vector<4x4xf32>
    %cst_80 = arith.constant dense<0.000000e+00> : vector<4x256xf32>
    %157 = tpu.matmul %156, %154, %cst_80 {dimension_numbers = #tpu.dot_dimension_numbers<[1], [0], [0], [1], [0, 0, 1, 1], [], []>} : vector<4x4xf32>, vector<4x256xf32>, vector<4x256xf32> -> vector<4x256xf32>
    %158 = arith.addf %153, %157 : vector<4x256xf32>
    %159 = vector.extract_strided_slice %99 {offsets = [0, 34], sizes = [4, 256], strides = [1, 1]} : vector<4x290xf32> to vector<4x256xf32>
    %cst_81 = arith.constant 0.000000e+00 : f32
    %160 = vector.shape_cast %22 : vector<1x256xi1> to vector<1x256xi1>
    %161 = vector.broadcast %160 : vector<1x256xi1> to vector<4x256xi1>
    %162 = vector.broadcast %cst_81 : f32 to vector<4x256xf32>
    %163 = arith.select %161, %159, %162 : vector<4x256xi1>, vector<4x256xf32>
    %c8_82 = arith.constant 8 : index
    %c0_83 = arith.constant 0 : index
    %c0_84 = arith.constant 0 : index
    %164 = vector.load %arg4[%c8_82, %c0_83, %c0_84] : memref<9x4x4xf32, #tpu.memory_space<vmem>>, vector<1x4x4xf32>
    %165 = vector.shape_cast %164 : vector<1x4x4xf32> to vector<4x4xf32>
    %cst_85 = arith.constant dense<0.000000e+00> : vector<4x256xf32>
    %166 = tpu.matmul %165, %163, %cst_85 {dimension_numbers = #tpu.dot_dimension_numbers<[1], [0], [0], [1], [0, 0, 1, 1], [], []>} : vector<4x4xf32>, vector<4x256xf32>, vector<4x256xf32> -> vector<4x256xf32>
    %167 = arith.addf %158, %166 : vector<4x256xf32>
    %c0_86 = arith.constant 0 : index
    %c0_87 = arith.constant 0 : index
    %168 = vector.load %arg5[%c0_86, %c0_87] : memref<4x1xf32, #tpu.memory_space<vmem>>, vector<4x1xf32>
    %169 = vector.broadcast %168 : vector<4x1xf32> to vector<4x256xf32>
    %170 = arith.addf %167, %169 : vector<4x256xf32>
    %171 = arith.addf %170, %1 : vector<4x256xf32>
    %cst_88 = arith.constant 0.000000e+00 : f32
    %172 = vector.broadcast %cst_88 : f32 to vector<4x256xf32>
    %173 = arith.maximumf %171, %172 : vector<4x256xf32>
    %c0_89 = arith.constant 0 : index
    %c0_90 = arith.constant 0 : index
    %c0_91 = arith.constant 0 : index
    %174 = vector.load %arg6[%c0_89, %c0_90, %c0_91] : memref<1x4x256xf32, #tpu.memory_space<vmem>>, vector<1x4x256xf32>
    %175 = vector.shape_cast %174 : vector<1x4x256xf32> to vector<4x256xf32>
    %176 = vector.shape_cast %173 : vector<4x256xf32> to vector<1x4x256xf32>
    tpu.vector_store %arg6[%c0_89, %c0_90, %c0_91], %176 {strides = array<i32>} : memref<1x4x256xf32, #tpu.memory_space<vmem>>, vector<1x4x256xf32>,
    return
  }
  func.func @transform_0(%arg0: i32) -> (i32, i32, i32) {
    %c0_i32 = arith.constant 0 : i32
    %c0_i32_0 = arith.constant 0 : i32
    %c0_i32_1 = arith.constant 0 : i32
    return %arg0, %c0_i32, %c0_i32_0 : i32, i32, i32
  }
  func.func @transform_1(%arg0: i32) -> (i32, i32, i32) {
    %c0_i32 = arith.constant 0 : i32
    %c0_i32_0 = arith.constant 0 : i32
    %c0_i32_1 = arith.constant 0 : i32
    %c0_i32_2 = arith.constant 0 : i32
    return %c0_i32, %c0_i32_0, %c0_i32_1 : i32, i32, i32
  }
  func.func @transform_2(%arg0: i32) -> (i32, i32) {
    %c0_i32 = arith.constant 0 : i32
    %c0_i32_0 = arith.constant 0 : i32
    %c0_i32_1 = arith.constant 0 : i32
    return %c0_i32, %c0_i32_0 : i32, i32
  }
  func.func @transform_3(%arg0: i32) -> (i32, i32, i32) {
    %c0_i32 = arith.constant 0 : i32
    %c0_i32_0 = arith.constant 0 : i32
    %c0_i32_1 = arith.constant 0 : i32
    %c0_i32_2 = arith.constant 0 : i32
    return %c0_i32, %c0_i32_0, %c0_i32_1 : i32, i32, i32
  }
  func.func @transform_4(%arg0: i32) -> (i32, i32) {
    %c0_i32 = arith.constant 0 : i32
    %c0_i32_0 = arith.constant 0 : i32
    %c0_i32_1 = arith.constant 0 : i32
    return %c0_i32, %c0_i32_0 : i32, i32
  }
  func.func @transform_5(%arg0: i32) -> (i32, i32, i32) {
    %c0_i32 = arith.constant 0 : i32
    %c0_i32_0 = arith.constant 0 : i32
    %c0_i32_1 = arith.constant 0 : i32
    return %arg0, %c0_i32, %c0_i32_0 : i32, i32, i32
  }
}

</mosaic_0001>

<bundles_post_ra>
// kernel: tpu_custom_call.1
= control target key start
LH: loop header
LB: loop body
LE: loop exit
PB: predicated region body
PF: predicated region fallthrough
CT: control target
= control target key end

     0   :  { %10 = vsyncpa [#allocation3], 0  ;;  %s2747_s0 = inlined_call_operand.vmem [shape: f32[2,4,256], index: 0, kind: input, shape index: {}]   ;;  %s2748_s1 = inlined_call_operand.vmem [shape: f32[9,4,4], index: 1, kind: input, shape index: {}]   ;;  %s2749_s2 = inlined_call_operand.vmem [shape: f32[4,1], index: 2, kind: input, shape index: {}]   ;;  %s2750_s3 = inlined_call_operand.vmem [shape: f32[9,4,4], index: 3, kind: input, shape index: {}]   ;;  %s2751_s4 = inlined_call_operand.vmem [shape: f32[4,1], index: 4, kind: input, shape index: {}]   ;;  %s2752_s5 = inlined_call_operand.hbm [shape: f32[2,4,256], index: 5, kind: output, shape index: {}]  }
   0x1   :  { %12 = vsyncpa [#allocation3 + $0x1], 0  ;;  %s2340_s18 = smov 0   ;;  %s2342_s19 = smov 0  }
   0x2   :  { %s2344_s20 = smov 0   ;;  %s2346_s21 = smov 0  }
   0x3 LB: > { %s2361_s22 = sadd.s32 4294967295, %s2296_s21   ;;  %s2066_s23 = sadd.s32 4294967294, %s2296_s21   ;;  %s2296_s21 = sphi %s2346_s21, %s2766_s21   ;;  %s2292_s20 = sphi %s2344_s20, %s2765_s20   ;;  %s2288_s19 = sphi %s2342_s19, %s2764_s19   ;;  %s2284_s18 = sphi %s2340_s18, %s2763_s18  }
   0x4   : > { %s2365_s24 = sadd.s32 1, %s2296_s21   ;;  %s135_s25 = sadd.s32 1, %s2292_s20 }
   0x5   : > { %s132_s26 = ssub.s32 %s2296_s21, %s2365_s24  ;;  %p145_p0 = scmp.ne.s32.totalorder %s2292_s20, %s2288_s19 }
   0x6   : > { %p133_p1 = scmp.eq.s32.totalorder %s132_s26, 0  ;;  %p146_p2 = scmp.eq.s32.totalorder %s2361_s22, 1 }
   0x7   : > { %p151_p3 = scmp.ne.s32.totalorder %s2288_s19, %s2284_s18  ;;  %p152_p4 = scmp.eq.s32.totalorder %s2066_s23, 1 }
   0x8   : > { %s2376_s27 = scalar_select %p133_p1, %s2292_s20, %s135_s25  }
   0x9   : > { %p2378_p5 = por %p146_p2, %p145_p0  ;;  %p2382_p6 = por %p152_p4, %p151_p3 }
   0xa   : > { %p2069_p7 = scmp.ge.s32.totalorder %s2296_s21, 1  ;;  %p190_p8 = scmp.lt.s32.totalorder %s2296_s21, 3 }
   0xc   : > { %p191_p9 = pnand %p2069_p7, %p190_p8 }
   0xd   : > { %p218_p10 = scmp.lt.s32.totalorder (!%p191_p9), %s2361_s22, 1  ;;  %s2298_s10 = smov (!%p191_p9), 17   ;;  %vm261_vm0 = vcmask (!%p191_p9), 138240   ;;  %v2299_v2 = vmov (!%p191_p9), 0.0   ;;  %v1119_v8 = vld [vmem:[%s2749_s2] sm:$0xf] (!%p191_p9)  ;;  %v224_v10 = vlaneseq (!%p191_p9) }
   0xe   : > { %194 = sbr.rel (%p191_p9) target bundleno = 1088 (0x440), region = 40  ;;  %361 = vmatprep.mubr.f32.mxu0 (!%p191_p9), %v2299_v2  ;;  %1227 = vmatprep.mubr.f32.mxu1 (!%p191_p9), %v2299_v2  ;;  %s2300_s11 = smov (!%p191_p9), 127   ;;  %v2308_v9 = vmov (!%p191_p9), 0   ;;  %vm285_vm1 = vcmask (!%p191_p9), 1039360   ;;  %vm292_vm2 = vcmask (!%p191_p9), 1043456   ;;  %vm288_vm4 = vcmask (!%p191_p9), 31744  }
   0xf   : > { %s2301_s12 = smov (!%p191_p9), 126   ;;  %s2302_s13 = smov (!%p191_p9), 112   ;;  %2232 = vset.pattern.permute.xlu0 (!%p191_p9), %v2308_v9  ;;  %v225_v11 = vand.u32 (!%p191_p9), 127, %v224_v10  ;;  %v2073_v22 = vld [vmem:[%s2748_s1 + $0x4] sm:$0xf] (!%p191_p9)  ;;  %vm458_vm6 = vcmask (!%p191_p9), 1031168  }
  0x10   : > { %s2303_s14 = smov (!%p191_p9), 111   ;;  %s2304_s15 = smov (!%p191_p9), 110   ;;  %v274_v35 = vld [vmem:[%s2748_s1] sm:$0xf] (!%p191_p9)  ;;  %vm555_vm9 = vcmask (!%p191_p9), 916480   ;;  %vm654_vm10 = vcmask (!%p191_p9), 908288  }
  0x11   : > { %s2305_s16 = smov (!%p191_p9), 96   ;;  %s2306_s17 = smov (!%p191_p9), 95   ;;  %v226_v13 = vadd.s32 (!%p191_p9), 128, %v225_v11  ;;  %v231_v17 = vand.u32 (!%p191_p9), 15, %v225_v11  ;;  %v2080_v43 = vld [vmem:[%s2748_s1 + $0x8] sm:$0xf] (!%p191_p9) }
  0x12   : > { %s2307_s23 = smov (!%p191_p9), 94   ;;  %vm743_vm11 = vcmask (!%p191_p9), 900096   ;;  %v2084_v50 = vld [vmem:[%s2748_s1 + $0xc] sm:$0xf] (!%p191_p9)  ;;  %vm840_vm12 = vcmask (!%p191_p9), 785408   ;;  %vm939_vm13 = vcmask (!%p191_p9), 777216  }
  0x13   : > { %v238_v16 = vand.u32 (!%p191_p9), 15, %v226_v13  ;;  %vm2453_vm5 = vcmp.ge.s32.totalorder (!%p191_p9), %v231_v17, 1  ;;  %vm2477_vm8 = vcmp.lt.s32.totalorder (!%p191_p9), %v231_v17, 15  ;;  %v2088_v57 = vld [vmem:[%s2748_s1 + $0x10] sm:$0xf] (!%p191_p9)  ;;  %vm1028_vm14 = vcmask (!%p191_p9), 769024  }
  0x14   : > { %v2096_v10 = vld [vmem:[%s2748_s1 + $0x18] sm:$0xf] (!%p191_p9)  ;;  %v2139_v25 = vld [vmem:[%s2750_s3 + $0x20] sm:$0xf] (!%p191_p9) }
  0x15   : > { %s219_s30 = scalar_select %p218_p10, %s2361_s22, 1  ;;  %vm2445_vm3 = vcmp.ge.s32.totalorder %v238_v16, 1  ;;  %vm2460_vm7 = vcmp.lt.s32.totalorder %v238_v16, 15  ;;  %v2100_v16 = vld [vmem:[%s2748_s1 + $0x1c] sm:$0xf] }
  0x17   : > { %s2148_s6 = sshll.u32 %s219_s30, 3 }
  0x18   : > { %s222_s9 = scalar_lea.vmem %s2747_s0, %s2148_s6 }
  0x19   : > { %v2393_v0 = vld [vmem:[%s222_s9] sm:$0xff] }
  0x1a   : > { %257 = vrot.lane.b32.xlu0 %v2393_v0, %s2298_s10  ;;  %v2399_v1 = vcombine.high %v2393_v0, %v2393_v0 }
  0x1e   : > { %259 = vrot.lane.b32.xlu0 %v2399_v1, %s2298_s10 }
  0x8c   : > { %v258_v3 = vpop.permute.xlu0 %257 }
  0x8d   : > { %v2406_v4 = vsel %vm261_vm0, 0.0, %v258_v3 }
  0x8e   : > { %279 = vrot.lane.b32.xlu0 %v2406_v4, %s2300_s11  ;;  %v272_v28 = vsel %vm2453_vm5, %v2406_v4, 0.0 }
  0x90   : > { %v260_v5 = vpop.permute.xlu0 %259 }
  0x91   : > { %v262_v6 = vsel %vm261_vm0, %v258_v3, %v260_v5  ;;  %v267_v7 = vsel %vm261_vm0, %v260_v5, 0.0 }
  0x92   : > { %456 = vrot.lane.b32.xlu0 %v267_v7, %s2301_s12  ;;  %281 = vrot.lane.b32.xlu1 %v262_v6, %s2300_s11  ;;  %v273_v26 = vsel %vm2445_vm3, %v262_v6, 0.0 }
  0x96   : > { %551 = vrot.lane.b32.xlu0 %v262_v6, %s2302_s13  ;;  %283 = vrot.lane.b32.xlu1 %v267_v7, %s2300_s11 }
  0x9a   : > { %549 = vrot.lane.b32.xlu0 %v2406_v4, %s2302_s13  ;;  %454 = vrot.lane.b32.xlu1 %v262_v6, %s2301_s12 }
  0x9e   : > { %652 = vrot.lane.b32.xlu0 %v267_v7, %s2303_s14  ;;  %452 = vrot.lane.b32.xlu1 %v2406_v4, %s2301_s12 }
  0xa2   : > { %739 = vrot.lane.b32.xlu0 %v262_v6, %s2304_s15  ;;  %553 = vrot.lane.b32.xlu1 %v267_v7, %s2302_s13 }
  0xa6   : > { %737 = vrot.lane.b32.xlu0 %v2406_v4, %s2304_s15  ;;  %650 = vrot.lane.b32.xlu1 %v262_v6, %s2303_s14 }
  0xaa   : > { %838 = vrot.lane.b32.xlu0 %v267_v7, %s2305_s16  ;;  %648 = vrot.lane.b32.xlu1 %v2406_v4, %s2303_s14 }
  0xae   : > { %935 = vrot.lane.b32.xlu0 %v262_v6, %s2306_s17  ;;  %741 = vrot.lane.b32.xlu1 %v267_v7, %s2304_s15 }
  0xb2   : > { %933 = vrot.lane.b32.xlu0 %v2406_v4, %s2306_s17  ;;  %836 = vrot.lane.b32.xlu1 %v262_v6, %s2305_s16 }
  0xb6   : > { %1026 = vrot.lane.b32.xlu0 %v267_v7, %s2307_s23  ;;  %834 = vrot.lane.b32.xlu1 %v2406_v4, %s2305_s16 }
  0xba   : > { %937 = vrot.lane.b32.xlu1 %v267_v7, %s2306_s17  ;;  %1122 = vperm.xlu0 %2232, %v1119_v8  }
  0xbe   : > { %1024 = vrot.lane.b32.xlu1 %v262_v6, %s2307_s23 }
  0xc2   : > { %1022 = vrot.lane.b32.xlu1 %v2406_v4, %s2307_s23  ;;  %v2092_v4 = vld [vmem:[%s2748_s1 + $0x14] sm:$0xf] }
 0x100   : > { %v280_v12 = vpop.permute.xlu0 %279 }
 0x104   : > { %v282_v14 = vpop.permute.xlu1 %281  ;;  %v457_v15 = vpop.permute.xlu0 %456 }
 0x105   : > { %v286_v24 = vsel %vm285_vm1, %v280_v12, %v282_v14 }
 0x108   : > { %v284_v18 = vpop.permute.xlu1 %283  ;;  %v552_v20 = vpop.permute.xlu0 %551 }
 0x109   : > { %v287_v21 = vsel %vm285_vm1, %v282_v14, %v284_v18  ;;  %v2104_v18 = vld [vmem:[%s2748_s1 + $0x20] sm:$0xf] }
 0x10a   : > { %2074 = vmatprep.subr.msk.mxu0 %vm292_vm2, %v287_v21 }
 0x10b   : > { %2075 = vmatpush1.msk.msra.mxu0 %vm292_vm2, %v286_v24 }
 0x10c   : > { %v455_v27 = vpop.permute.xlu1 %454  ;;  %2076 = vmatmul.mubr.msk.f32.vlgmr.msra.gmra.mrb[0].mxu0 %vm288_vm4, %v2073_v22  ;;  %2077 = vmatprep.subr.msk.mxu0 %vm292_vm2, %v273_v26  ;;  %v550_v31 = vpop.permute.xlu0 %549 }
 0x10d   : > { %v460_v29 = vsel %vm458_vm6, %v455_v27, %v457_v15  ;;  %2078 = vmatpush1.msk.msra.mxu0 %vm292_vm2, %v272_v28  ;;  %441 = vmatprep.mubr.f32.mxu0 %v2299_v2  ;;  %v556_v42 = vsel %vm555_vm9, %v550_v31, %v552_v20 }
 0x10e   : > { %v464_v30 = vsel %vm2460_vm7, %v460_v29, 0.0  ;;  %v560_v45 = vsel %vm2453_vm5, %v556_v42, 0.0 }
 0x10f   : > { %2081 = vmatprep.subr.msk.mxu0 %vm292_vm2, %v464_v30 }
 0x110   : > { %v453_v33 = vpop.permute.xlu1 %452  ;;  %v653_v38 = vpop.permute.xlu0 %652 }
 0x111   : > { %v459_v34 = vsel %vm458_vm6, %v453_v33, %v455_v27 }
 0x112   : > { %v463_v36 = vsel %vm2477_vm8, %v459_v34, 0.0 }
 0x114   : > { %v554_v37 = vpop.permute.xlu1 %553  ;;  %2079 = vmatmul.mubr.msk.f32.vlgmr.msra.gmra.mrb[0].mxu0 %vm288_vm4, %v274_v35  ;;  %v740_v44 = vpop.permute.xlu0 %739  ;;  %v1974_v35 = vld [vmem:[%s2751_s4] sm:$0xf] }
 0x115   : > { %v557_v39 = vsel %vm555_vm9, %v552_v20, %v554_v37  ;;  %2082 = vmatpush1.msk.msra.mxu0 %vm292_vm2, %v463_v36  ;;  %540 = vmatprep.mubr.f32.mxu0 %v2299_v2 }
 0x116   : > { %v561_v40 = vsel %vm2445_vm3, %v557_v39, 0.0 }
 0x117   : > { %2085 = vmatprep.subr.msk.mxu0 %vm292_vm2, %v561_v40 }
 0x118   : > { %v651_v41 = vpop.permute.xlu1 %650  ;;  %v738_v49 = vpop.permute.xlu0 %737 }
 0x119   : > { %v656_v47 = vsel %vm654_vm10, %v651_v41, %v653_v38  ;;  %v744_v56 = vsel %vm743_vm11, %v738_v49, %v740_v44 }
 0x11a   : > { %v748_v60 = vsel %vm2477_vm8, %v744_v56, 0.0 }
 0x11c   : > { %v649_v46 = vpop.permute.xlu1 %648  ;;  %2083 = vmatmul.mubr.msk.f32.vlgmr.msra.gmra.mrb[0].mxu0 %vm288_vm4, %v2080_v43  ;;  %v839_v55 = vpop.permute.xlu0 %838 }
 0x11d   : > { %2086 = vmatpush1.msk.msra.mxu0 %vm292_vm2, %v560_v45  ;;  %637 = vmatprep.mubr.f32.mxu0 %v2299_v2  ;;  %v655_v52 = vsel %vm654_vm10, %v649_v46, %v651_v41  ;;  %v2108_v41 = vld [vmem:[%s2750_s3 + $0x4] sm:$0xf] }
 0x11e   : > { %2089 = vmatprep.subr.msk.mxu0 %vm292_vm2, %v656_v47 }
 0x120   : > { %v742_v48 = vpop.permute.xlu1 %741  ;;  %v936_v61 = vpop.permute.xlu0 %935 }
 0x121   : > { %v745_v51 = vsel %vm743_vm11, %v740_v44, %v742_v48 }
 0x122   : > { %v749_v53 = vsel %vm2460_vm7, %v745_v51, 0.0 }
 0x124   : > { %2087 = vmatmul.mubr.msk.f32.vlgmr.msra.gmra.mrb[0].mxu0 %vm288_vm4, %v2084_v50  ;;  %v837_v54 = vpop.permute.xlu1 %836  ;;  %v934_v5 = vpop.permute.xlu0 %933 }
 0x125   : > { %2090 = vmatpush1.msk.msra.mxu0 %vm292_vm2, %v655_v52  ;;  %728 = vmatprep.mubr.f32.mxu0 %v2299_v2  ;;  %v842_v58 = vsel %vm840_vm12, %v837_v54, %v839_v55  ;;  %v940_v12 = vsel %vm939_vm13, %v934_v5, %v936_v61  ;;  %v1143_v52 = vld [vmem:[%s2750_s3] sm:$0xf] }
 0x126   : > { %2093 = vmatprep.subr.msk.mxu0 %vm292_vm2, %v749_v53  ;;  %v846_v62 = vsel %vm2445_vm3, %v842_v58, 0.0 }
 0x128   : > { %v835_v59 = vpop.permute.xlu1 %834  ;;  %v1027_v9 = vpop.permute.xlu0 %1026 }
 0x129   : > { %v841_v63 = vsel %vm840_vm12, %v835_v59, %v837_v54 }
 0x12a   : > { %v845_v6 = vsel %vm2453_vm5, %v841_v63, 0.0 }
 0x12c   : > { %2091 = vmatmul.mubr.msk.f32.vlgmr.msra.gmra.mrb[0].mxu0 %vm288_vm4, %v2088_v57  ;;  %v938_v3 = vpop.permute.xlu1 %937 }
 0x12d   : > { %2094 = vmatpush1.msk.msra.mxu0 %vm292_vm2, %v748_v60  ;;  %825 = vmatprep.mubr.f32.mxu0 %v2299_v2  ;;  %v941_v7 = vsel %vm939_vm13, %v936_v61, %v938_v3  ;;  %v2115_v61 = vld [vmem:[%s2750_s3 + $0x8] sm:$0xf] }
 0x12e   : > { %2097 = vmatprep.subr.msk.mxu0 %vm292_vm2, %v846_v62 }
 0x130   : > { %v1025_v8 = vpop.permute.xlu1 %1024 }
 0x131   : > { %v1030_v11 = vsel %vm1028_vm14, %v1025_v8, %v1027_v9 }
 0x132   : > { %v1034_v13 = vsel %vm2460_vm7, %v1030_v11, 0.0 }
 0x134   : > { %2095 = vmatmul.mubr.msk.f32.vlgmr.msra.gmra.mrb[0].mxu0 %vm288_vm4, %v2092_v4  ;;  %v1023_v14 = vpop.permute.xlu1 %1022 }
 0x135   : > { %2098 = vmatpush1.msk.msra.mxu0 %vm292_vm2, %v845_v6  ;;  %922 = vmatprep.mubr.f32.mxu0 %v2299_v2  ;;  %v1029_v15 = vsel %vm1028_vm14, %v1023_v14, %v1025_v8  ;;  %v2119_v6 = vld [vmem:[%s2750_s3 + $0xc] sm:$0xf] }
 0x136   : > { %2101 = vmatprep.subr.msk.mxu0 %vm292_vm2, %v941_v7  ;;  %v1033_v17 = vsel %vm2477_vm8, %v1029_v15, 0.0 }
 0x139   : > { %v1123_v20 = vpop.permute.xlu0 %1122 }
 0x13c   : > { %2099 = vmatmul.mubr.msk.f32.vlgmr.msra.gmra.mrb[0].mxu0 %vm288_vm4, %v2096_v10 }
 0x13d   : > { %2102 = vmatpush1.msk.msra.mxu0 %vm292_vm2, %v940_v12  ;;  %1013 = vmatprep.mubr.f32.mxu0 %v2299_v2 }
 0x13e   : > { %2105 = vmatprep.subr.msk.mxu0 %vm292_vm2, %v1034_v13  ;;  %v2123_v13 = vld [vmem:[%s2750_s3 + $0x10] sm:$0xf] }
 0x144   : > { %2103 = vmatmul.mubr.msk.f32.vlgmr.msra.gmra.mrb[0].mxu0 %vm288_vm4, %v2100_v16 }
 0x145   : > { %2106 = vmatpush1.msk.msra.mxu0 %vm292_vm2, %v1033_v17  ;;  %1110 = vmatprep.mubr.f32.mxu0 %v2299_v2 }
 0x14c   : > { %2107 = vmatmul.mubr.msk.f32.vlgmr.msra.gmra.mrb[0].mxu0 %vm288_vm4, %v2104_v18 }
 0x21f   : > { %v1112_v21 = vpop.f32.mrb[0].mxu0 }
 0x220   : > { %v1125_v22 = vadd.f32 %v1123_v20, %v1112_v21  ;;  %v1114_v24 = vpop.f32.mrb[1].mxu0 }
 0x221   : > { %v1126_v27 = vadd.f32 %v1123_v20, %v1114_v24 }
 0x222   : > { %v1127_v26 = vmax.f32 %v1125_v22, 0.0  ;;  %v2127_v22 = vld [vmem:[%s2750_s3 + $0x14] sm:$0xf] }
 0x223   : > { %v1128_v28 = vmax.f32 %v1126_v27, 0.0 }
 0x224   : > { %1131 = vrot.lane.b32.xlu1 %v1127_v26, %s2298_s10 }
 0x228   : > { %1133 = vrot.lane.b32.xlu1 %v1128_v28, %s2298_s10 }
 0x296   : > { %v1132_v29 = vpop.permute.xlu1 %1131 }
 0x297   : > { %v1139_v34 = vsel %vm261_vm0, 0.0, %v1132_v29 }
 0x298   : > { %v1141_v44 = vsel %vm2453_vm5, %v1139_v34, 0.0 }
 0x29a   : > { %v1134_v30 = vpop.permute.xlu1 %1133 }
 0x29b   : > { %v1135_v31 = vsel %vm261_vm0, %v1132_v29, %v1134_v30  ;;  %v1140_v33 = vsel %vm261_vm0, %v1134_v30, 0.0  ;;  %v2131_v29 = vld [vmem:[%s2750_s3 + $0x18] sm:$0xf] }
 0x29c   : > { %1152 = vrot.lane.b32.xlu1 %v1140_v33, %s2300_s11  ;;  %1150 = vrot.lane.b32.xlu0 %v1135_v31, %s2300_s11  ;;  %v1142_v43 = vsel %vm2445_vm3, %v1135_v31, 0.0 }
 0x2a0   : > { %1316 = vrot.lane.b32.xlu1 %v1135_v31, %s2301_s12  ;;  %1148 = vrot.lane.b32.xlu0 %v1139_v34, %s2300_s11 }
 0x2a4   : > { %1314 = vrot.lane.b32.xlu1 %v1139_v34, %s2301_s12  ;;  %1318 = vrot.lane.b32.xlu0 %v1140_v33, %s2301_s12 }
 0x2a8   : > { %1414 = vrot.lane.b32.xlu1 %v1140_v33, %s2302_s13  ;;  %1412 = vrot.lane.b32.xlu0 %v1135_v31, %s2302_s13 }
 0x2ac   : > { %1510 = vrot.lane.b32.xlu1 %v1135_v31, %s2303_s14  ;;  %1410 = vrot.lane.b32.xlu0 %v1139_v34, %s2302_s13 }
 0x2b0   : > { %1508 = vrot.lane.b32.xlu1 %v1139_v34, %s2303_s14  ;;  %1512 = vrot.lane.b32.xlu0 %v1140_v33, %s2303_s14  ;;  %s215_s14 = sand.u32 1, %s2288_s19  }
 0x2b1   : > { %s1993_s30 = scalar_lea.sflag [#allocation3], %s215_s14 }
 0x2b4   : > { %1600 = vrot.lane.b32.xlu1 %v1140_v33, %s2304_s15  ;;  %1598 = vrot.lane.b32.xlu0 %v1135_v31, %s2304_s15 }
 0x2b8   : > { %1694 = vrot.lane.b32.xlu1 %v1135_v31, %s2305_s16  ;;  %1596 = vrot.lane.b32.xlu0 %v1139_v34, %s2304_s15  ;;  %s2070_s15 = sshll.u32 %s215_s14, 3 }
 0x2bc   : > { %1692 = vrot.lane.b32.xlu1 %v1139_v34, %s2305_s16  ;;  %1696 = vrot.lane.b32.xlu0 %v1140_v33, %s2305_s16  ;;  %s2149_s16 = sshll.u32 %s2361_s22, 7  ;;  %s2309_s22 = smov [#allocation2]  }
 0x2bd   : > { %s2705_s26 = scalar_lea.hbm %s2752_s5, %s2149_s16  ;;  %s2238_s7 = sshll.u32 %s2309_s22, 4  ;;  %s2239_s7 = int_to_ptr.vmem [resolvable:$false] %s2238_s7 }
 0x2be   : > { %s2240_s8 = scalar_lea.vmem %s2239_s7, 256 }
 0x2c0   : > { %1794 = vrot.lane.b32.xlu1 %v1140_v33, %s2306_s17  ;;  %1792 = vrot.lane.b32.xlu0 %v1135_v31, %s2306_s17 }
 0x2c4   : > { %1880 = vrot.lane.b32.xlu1 %v1135_v31, %s2307_s23  ;;  %1790 = vrot.lane.b32.xlu0 %v1139_v34, %s2306_s17  ;;  %s217_s17 = scalar_lea.vmem [#allocation2], %s2070_s15 }
 0x2c8   : > { %1878 = vrot.lane.b32.xlu1 %v1139_v34, %s2307_s23  ;;  %1882 = vrot.lane.b32.xlu0 %v1140_v33, %s2307_s23  ;;  %s2007_s23 = sshll.u32 %s217_s17, 4  ;;  %s2707_s23 = int_to_ptr.vmem [resolvable:$true] %s2007_s23 }
 0x2c9   : > { %s2234_s6 = scalar_lea.vmem %s2707_s23, 128  ;;  %p2241_p0 = scmp.lt.s32.totalorder %s2707_s23, %s2239_s7 }
 0x2ca   : > { %p2235_p11 = scmp.ne.s32.totalorder %s2707_s23, %s2234_s6  ;;  %p2242_p1 = scmp.lt.s32.totalorder %s2240_s8, %s2234_s6 }
 0x2cc   : > { %1977 = vperm.xlu0 %2232, %v1974_v35   ;;  %v2135_v35 = vld [vmem:[%s2750_s3 + $0x1c] sm:$0xf]  ;;  %p2236_p12 = pnand %p2235_p11, %p2378_p5  ;;  %p2243_p2 = por %p2242_p1, %p2241_p0 }
 0x2ce   : > { %p2237_p13 = pneg %p2236_p12 }
 0x2d0   : > { %p2244_p3 = pnand %p2243_p2, %p2237_p13 }
 0x30e   : > { %v1153_v36 = vpop.permute.xlu1 %1152  ;;  %v1151_v37 = vpop.permute.xlu0 %1150 }
 0x30f   : > { %v1155_v38 = vsel %vm285_vm1, %v1151_v37, %v1153_v36 }
 0x310   : > { %2109 = vmatprep.subr.msk.mxu1 %vm292_vm2, %v1155_v38 }
 0x312   : > { %v1317_v39 = vpop.permute.xlu1 %1316  ;;  %v1149_v40 = vpop.permute.xlu0 %1148 }
 0x313   : > { %v1154_v42 = vsel %vm285_vm1, %v1149_v40, %v1151_v37 }
 0x314   : > { %2110 = vmatpush1.msk.msra.mxu1 %vm292_vm2, %v1154_v42 }
 0x315   : > { %2111 = vmatmul.mubr.msk.f32.vlgmr.msra.gmra.mrb[0].mxu1 %vm288_vm4, %v2108_v41  ;;  %2112 = vmatprep.subr.msk.mxu1 %vm292_vm2, %v1142_v43 }
 0x316   : > { %v1315_v45 = vpop.permute.xlu1 %1314  ;;  %v1319_v46 = vpop.permute.xlu0 %1318  ;;  %2113 = vmatpush1.msk.msra.mxu1 %vm292_vm2, %v1141_v44  ;;  %1307 = vmatprep.mubr.f32.mxu1 %v2299_v2 }
 0x317   : > { %v1321_v47 = vsel %vm458_vm6, %v1317_v39, %v1319_v46  ;;  %v1320_v49 = vsel %vm458_vm6, %v1315_v45, %v1317_v39 }
 0x318   : > { %v1325_v48 = vsel %vm2460_vm7, %v1321_v47, 0.0  ;;  %v1324_v55 = vsel %vm2477_vm8, %v1320_v49, 0.0 }
 0x319   : > { %2116 = vmatprep.subr.msk.mxu1 %vm292_vm2, %v1325_v48 }
 0x31a   : > { %v1415_v50 = vpop.permute.xlu1 %1414  ;;  %v1413_v51 = vpop.permute.xlu0 %1412 }
 0x31b   : > { %v1417_v53 = vsel %vm555_vm9, %v1413_v51, %v1415_v50 }
 0x31c   : > { %v1421_v54 = vsel %vm2445_vm3, %v1417_v53, 0.0 }
 0x31d   : > { %2114 = vmatmul.mubr.msk.f32.vlgmr.msra.gmra.mrb[0].mxu1 %vm288_vm4, %v1143_v52 }
 0x31e   : > { %2117 = vmatpush1.msk.msra.mxu1 %vm292_vm2, %v1324_v55  ;;  %v1511_v56 = vpop.permute.xlu1 %1510  ;;  %v1411_v57 = vpop.permute.xlu0 %1410  ;;  %1401 = vmatprep.mubr.f32.mxu1 %v2299_v2 }
 0x31f   : > { %2120 = vmatprep.subr.msk.mxu1 %vm292_vm2, %v1421_v54  ;;  %v1416_v58 = vsel %vm555_vm9, %v1411_v57, %v1413_v51 }
 0x320   : > { %v1420_v62 = vsel %vm2453_vm5, %v1416_v58, 0.0 }
 0x322   : > { %v1509_v59 = vpop.permute.xlu1 %1508  ;;  %v1513_v60 = vpop.permute.xlu0 %1512 }
 0x323   : > { %v1515_v63 = vsel %vm654_vm10, %v1511_v56, %v1513_v60  ;;  %v1514_v8 = vsel %vm654_vm10, %v1509_v59, %v1511_v56 }
 0x325   : > { %2118 = vmatmul.mubr.msk.f32.vlgmr.msra.gmra.mrb[0].mxu1 %vm288_vm4, %v2115_v61 }
 0x326   : > { %2121 = vmatpush1.msk.msra.mxu1 %vm292_vm2, %v1420_v62  ;;  %v1599_v3 = vpop.permute.xlu0 %1598  ;;  %1497 = vmatprep.mubr.f32.mxu1 %v2299_v2  ;;  %v1601_v4 = vpop.permute.xlu1 %1600 }
 0x327   : > { %2124 = vmatprep.subr.msk.mxu1 %vm292_vm2, %v1515_v63  ;;  %v1603_v7 = vsel %vm743_vm11, %v1599_v3, %v1601_v4 }
 0x328   : > { %v1607_v9 = vsel %vm2460_vm7, %v1603_v7, 0.0 }
 0x32a   : > { %v1597_v5 = vpop.permute.xlu0 %1596  ;;  %v1695_v11 = vpop.permute.xlu1 %1694 }
 0x32b   : > { %v1602_v12 = vsel %vm743_vm11, %v1597_v5, %v1599_v3 }
 0x32c   : > { %v1606_v16 = vsel %vm2477_vm8, %v1602_v12, 0.0 }
 0x32d   : > { %2122 = vmatmul.mubr.msk.f32.vlgmr.msra.gmra.mrb[0].mxu1 %vm288_vm4, %v2119_v6 }
 0x32e   : > { %2125 = vmatpush1.msk.msra.mxu1 %vm292_vm2, %v1514_v8  ;;  %v1697_v10 = vpop.permute.xlu0 %1696  ;;  %1587 = vmatprep.mubr.f32.mxu1 %v2299_v2  ;;  %v1693_v17 = vpop.permute.xlu1 %1692 }
 0x32f   : > { %2128 = vmatprep.subr.msk.mxu1 %vm292_vm2, %v1607_v9  ;;  %v1699_v14 = vsel %vm840_vm12, %v1695_v11, %v1697_v10  ;;  %v1698_v20 = vsel %vm840_vm12, %v1693_v17, %v1695_v11 }
 0x330   : > { %v1703_v18 = vsel %vm2445_vm3, %v1699_v14, 0.0  ;;  %v1702_v26 = vsel %vm2453_vm5, %v1698_v20, 0.0 }
 0x332   : > { %v1793_v15 = vpop.permute.xlu0 %1792  ;;  %v1795_v24 = vpop.permute.xlu1 %1794 }
 0x333   : > { %v1797_v19 = vsel %vm939_vm13, %v1793_v15, %v1795_v24 }
 0x335   : > { %2126 = vmatmul.mubr.msk.f32.vlgmr.msra.gmra.mrb[0].mxu1 %vm288_vm4, %v2123_v13 }
 0x336   : > { %2129 = vmatpush1.msk.msra.mxu1 %vm292_vm2, %v1606_v16  ;;  %1683 = vmatprep.mubr.f32.mxu1 %v2299_v2  ;;  %v1791_v21 = vpop.permute.xlu0 %1790  ;;  %v1881_v28 = vpop.permute.xlu1 %1880 }
 0x337   : > { %2132 = vmatprep.subr.msk.mxu1 %vm292_vm2, %v1703_v18  ;;  %v1796_v23 = vsel %vm939_vm13, %v1791_v21, %v1793_v15 }
 0x33a   : > { %v1883_v27 = vpop.permute.xlu0 %1882  ;;  %v1879_v33 = vpop.permute.xlu1 %1878 }
 0x33b   : > { %v1885_v30 = vsel %vm1028_vm14, %v1881_v28, %v1883_v27  ;;  %v1884_v34 = vsel %vm1028_vm14, %v1879_v33, %v1881_v28 }
 0x33c   : > { %v1889_v31 = vsel %vm2460_vm7, %v1885_v30, 0.0  ;;  %v1888_v36 = vsel %vm2477_vm8, %v1884_v34, 0.0 }
 0x33d   : > { %2130 = vmatmul.mubr.msk.f32.vlgmr.msra.gmra.mrb[0].mxu1 %vm288_vm4, %v2127_v22 }
 0x33e   : > { %2133 = vmatpush1.msk.msra.mxu1 %vm292_vm2, %v1702_v26  ;;  %1779 = vmatprep.mubr.f32.mxu1 %v2299_v2 }
 0x33f   : > { %2136 = vmatprep.subr.msk.mxu1 %vm292_vm2, %v1797_v19 }
 0x345   : > { %2134 = vmatmul.mubr.msk.f32.vlgmr.msra.gmra.mrb[0].mxu1 %vm288_vm4, %v2131_v29 }
 0x346   : > { %2137 = vmatpush1.msk.msra.mxu1 %vm292_vm2, %v1796_v23  ;;  %1869 = vmatprep.mubr.f32.mxu1 %v2299_v2 }
 0x347   : > { %2140 = vmatprep.subr.msk.mxu1 %vm292_vm2, %v1889_v31 }
 0x34b   : > { %v1978_v37 = vpop.permute.xlu0 %1977 }
 0x34d   : > { %2138 = vmatmul.mubr.msk.f32.vlgmr.msra.gmra.mrb[0].mxu1 %vm288_vm4, %v2135_v35 }
 0x34e   : > { %2141 = vmatpush1.msk.msra.mxu1 %vm292_vm2, %v1888_v36  ;;  %1965 = vmatprep.mubr.f32.mxu1 %v2299_v2 }
 0x355   : > { %2142 = vmatmul.mubr.msk.f32.vlgmr.msra.gmra.mrb[0].mxu1 %vm288_vm4, %v2139_v25 }
 0x428   : > { %v1967_v38 = vpop.f32.mrb[0].mxu1 }
 0x429   : > { %v1980_v39 = vadd.f32 %v1978_v37, %v1967_v38  ;;  %v1969_v32 = vpop.f32.mrb[1].mxu1 }
 0x42a   : > { %v1981_v40 = vadd.f32 %v1978_v37, %v1969_v32 }
 0x42b   : > { %v1983_v41 = vadd.f32 %v1980_v39, %v2393_v0 }
 0x42c   : > { %v1984_v42 = vadd.f32 %v1981_v40, %v2399_v1 }
 0x42d   : > { %v1985_v43 = vmax.f32 %v1983_v41, 0.0 }
 0x42e   : > { %v1986_v2 = vmax.f32 %v1984_v42, 0.0 }
 0x430   : > { %v1989_v44 = vcombine.low %v1985_v43, %v1986_v2 }
 0x432   : > { %1991 = vst [vmem:[%s217_s17] sm:$0xff] %v1989_v44 }
 0x433   : > { %2247 = shalt.err (!%p2244_p3)
}
 0x434   : > { %s2248_s10 = scalar_lea.hbm %s2705_s26, 128  ;;  %s2252_s13 = scalar_lea.hbm %s2752_s5, 256 }
 0x435   : > { %p2249_p4 = scmp.ne.s32.totalorder %s2705_s26, %s2248_s10  ;;  %p2253_p9 = scmp.lt.u32.totalorder %s2705_s26, %s2752_s5 }
 0x436   : > { %p2254_p10 = scmp.lt.u32.totalorder %s2252_s13, %s2248_s10  ;;  %p2256_p12 = scmp.lt.u32.totalorder %s2248_s10, %s2705_s26 }
 0x437   : > { %p2250_p7 = pnand %p2249_p4, %p2378_p5 }
 0x438   : > { %p2255_p11 = por %p2254_p10, %p2253_p9 }
 0x439   : > { %p2251_p8 = pneg %p2250_p7 }
 0x43a   : > { %p2257_p13 = por %p2256_p12, %p2255_p11 }
 0x43c   : > { %p2258_p0 = pnand %p2257_p13, %p2251_p8 }
 0x43e   : > { %2261 = shalt.err (!%p2258_p0)
}
 0x43f   : > { %2182 = dma.vmem_to_hbm [thread:$0]  (%p2378_p5), %s2707_s23, 128, %s2705_s26, %s1993_s30  }
 0x440 PF: > { %p2188_p1 = scmp.ge.s32.totalorder %s2296_s21, 2  ;;  %s2019_s16 = sand.u32 1, %s2284_s18  }
 0x441   : > { %s2020_s17 = scalar_lea.sflag [#allocation3], %s2019_s16 }
 0x442   : > { %p2185_p2 = pnand %p2188_p1, %p2382_p6 }
 0x444   : > { %2279 = dma.done.wait (!%p2185_p2), %s2020_s17, 128  }
 0x445   : > { %2281 = vsyncadd (!%p2185_p2), %s2020_s17, 4294967168  ;;  %p15_p3 = scmp.ge.s32.totalorder %s2365_s24, 4   ;;  %s2763_s18 = smov %s2288_s19 }
 0x446   : > { %s2764_s19 = smov %s2292_s20  ;;  %s2765_s20 = smov %s2376_s27 }
 0x447   : > { %s2766_s21 = smov %s2365_s24  ;;  %17 = sbr.rel (!%p15_p3) target bundleno = 3 (0x3), region = 91 }
 0x44e   :  { %2025 = vsyncpa [#allocation3], 1 }
 0x44f   :  { %2027 = vsyncpa [#allocation3 + $0x1], 1 }

</bundles_post_ra>
